<compile_context>
chip_gen: v7x
topology: tpu7x:2x2x1
jax: 0.10.0
libtpu: 0.0.40
codegen_flags: <defaults>
</compile_context>

<pallas_src>
import functools

import jax
import jax.numpy as jnp
from jax.experimental import pallas as pl
from jax.experimental.pallas import tpu as pltpu

_MIN_BLOCK_BYTES = 1 << 20        # per-grid-step block floor (~85% HBM roofline plateau)
_VMEM_HEADROOM = 8 << 20


def _largest_divisor_leq(n, cap):
    cap = max(1, min(n, cap))
    for d in range(cap, 0, -1):
        if n % d == 0:
            return d
    return 1


def _vmem_budget(max_block_bytes):
    """Returns (block budget, vmem_limit hard cap, small_vmem/dual-TC flag)."""
    try:
        vmem_cap = int(pltpu.get_tpu_info().vmem_capacity_bytes)
    except Exception:
        vmem_cap = 64 << 20                       # conservative default (v7x-sized)
    vmem_cap = max(min(vmem_cap, 128 << 20), 32 << 20)
    small_vmem = vmem_cap <= (64 << 20)           # v7x-class part (64 MiB / TC, 2 TCs)
    hard_cap = max(vmem_cap - _VMEM_HEADROOM, 16 << 20)
    if max_block_bytes is not None:
        budget = int(max_block_bytes)
    else:
        budget = (40 << 20) if small_vmem else (96 << 20)
    return min(budget, hard_cap), hard_cap, small_vmem


def _channel_conv_gate(pooled, w, k_size):
    """pooled: (C, 1) f32; w: list of k_size scalars.  sigmoid(1-D conv across C)."""
    C = pooled.shape[0]
    pad = (k_size - 1) // 2
    if pad > 0:
        zeros = jnp.zeros((pad, 1), dtype=jnp.float32)
        padded = jnp.concatenate([zeros, pooled, zeros], axis=0)   # (C + 2*pad, 1)
    else:
        padded = pooled
    y = jnp.zeros((C, 1), dtype=jnp.float32)
    for k in range(k_size):
        y = y + w[k] * padded[k:k + C, :]
    return jax.nn.sigmoid(y)                                       # (C, 1) f32


# ---------------------------------------------------------------------------
# Fast path: single pass, one (NB, C, HW) block per grid step.
# ---------------------------------------------------------------------------
def _eca_fused_kernel(x_ref, w_ref, o_ref, *, hw_true, k_size, nb):
    w = [w_ref[k] for k in range(k_size)]          # hoisted SMEM scalar reads
    inv_hw = 1.0 / float(hw_true)

    def one_batch(b):
        # f32 accumulation for the pool; no f32 copy of the big tile.
        pooled = jnp.sum(x_ref[b], axis=-1, keepdims=True,
                         dtype=jnp.float32) * inv_hw               # (C, 1)
        gate = _channel_conv_gate(pooled, w, k_size)               # (C, 1) f32
        o_ref[b] = x_ref[b] * gate.astype(o_ref.dtype)             # native-dtype gating

    if nb <= 4:                                    # small static unroll
        for b in range(nb):
            one_batch(b)
    else:                                          # keep register pressure flat
        def body(b, carry):
            one_batch(b)
            return carry
        jax.lax.fori_loop(0, nb, body, 0)


# ---------------------------------------------------------------------------
# Fallback pass 1: per-channel pooled sums over HW (independent per C tile).
# ---------------------------------------------------------------------------
def _eca_pool_kernel(x_ref, s_ref):
    s_ref[0] = jnp.sum(x_ref[0], axis=-1, keepdims=True, dtype=jnp.float32)


# ---------------------------------------------------------------------------
# Fallback pass 2: broadcast multiply, C-tiled.
# ---------------------------------------------------------------------------
def _eca_apply_kernel(x_ref, g_ref, o_ref):
    o_ref[0] = x_ref[0] * g_ref[0].astype(o_ref.dtype)


def eca_forward(x, conv_weight, k_size=3, *, max_block_bytes=None):
    """x: (N, C, H, W).  conv_weight: (1, 1, k_size) Conv1d weight (no bias)."""
    N, C, H, W = x.shape
    HW = H * W
    itemsize = jnp.dtype(x.dtype).itemsize
    w1 = conv_weight.reshape(k_size).astype(jnp.float32)           # SMEM scalars

    budget, hard_cap, small_vmem = _vmem_budget(max_block_bytes)
    slack = 256 << 10

    x2 = x.reshape(N, C, HW)                       # no HW padding: full-extent last dim
    per_batch_bytes = C * HW * itemsize
    total_bytes = N * per_batch_bytes

    def fused_est(nb):
        # 2 double-buffered input blocks + 2 output blocks; (C,1)-sized temps are noise.
        return 4 * nb * per_batch_bytes + slack

    fused_fits = fused_est(1) <= budget
    NB, steps = 1, 0
    if fused_fits:
        nb_budget = max(1, (budget - slack) // (4 * per_batch_bytes))
        nb_for_min_block = max(1, -(-_MIN_BLOCK_BYTES // per_batch_bytes))
        # Max grid steps subject to blocks >= ~1 MiB and the VMEM budget.
        NB = _largest_divisor_leq(N, min(N, nb_budget, nb_for_min_block))
        steps = N // NB

    # On dual-TC / small-VMEM parts, a 1-step grid over a big tensor leaves a core
    # idle and cannot pipeline; route that case to the parallel two-pass path.
    use_fused = fused_fits and (steps >= 2 or total_bytes <= (8 << 20) or not small_vmem)

    if use_fused:
        # ----------------------- single-pass fused path -----------------------
        kernel = functools.partial(_eca_fused_kernel, hw_true=HW,
                                   k_size=k_size, nb=NB)
        vmem_limit = int(min(max(fused_est(NB) + (16 << 20), 32 << 20), hard_cap))

        out2 = pl.pallas_call(
            kernel,
            out_shape=jax.ShapeDtypeStruct((N, C, HW), x.dtype),
            grid_spec=pltpu.PrefetchScalarGridSpec(
                num_scalar_prefetch=0,
                grid=(N // NB,),
                in_specs=[
                    pl.BlockSpec((NB, C, HW), lambda n: (n, 0, 0)),
                    pl.BlockSpec(memory_space=pltpu.MemorySpace.SMEM),
                ],
                out_specs=pl.BlockSpec((NB, C, HW), lambda n: (n, 0, 0)),
            ),
            compiler_params=pltpu.CompilerParams(
                dimension_semantics=("parallel",),
                vmem_limit_bytes=vmem_limit),
        )(x2, w1)
        return out2.reshape(N, C, H, W)

    # ----------------- two-pass C-tiled fallback --------------------
    row_bytes = HW * itemsize
    if C <= 8:
        Ct = C                                      # full extent (exempt from 8-rule)
    else:
        ct_budget = max(8, ((budget - slack) // (4 * row_bytes)) // 8 * 8)
        ct_min_block = max(8, ((-(-_MIN_BLOCK_BYTES // row_bytes)) + 7) // 8 * 8)
        Ct = max(8, min(ct_budget, ct_min_block, ((C + 7) // 8) * 8))
    n_c = -(-C // Ct)                               # cdiv; partial tail block is masked

    est2 = 4 * Ct * row_bytes + 8 * Ct * 4 + slack
    vmem_limit = int(min(max(est2 + (16 << 20), 32 << 20), hard_cap))

    # Pass 1: per-channel pooled sums (embarrassingly parallel over (N, C-tiles)).
    sums = pl.pallas_call(
        _eca_pool_kernel,
        out_shape=jax.ShapeDtypeStruct((N, C, 1), jnp.float32),
        grid_spec=pltpu.PrefetchScalarGridSpec(
            num_scalar_prefetch=0,
            grid=(N, n_c),
            in_specs=[pl.BlockSpec((1, Ct, HW), lambda n, c: (n, c, 0))],
            out_specs=pl.BlockSpec((1, Ct, 1), lambda n, c: (n, c, 0)),
        ),
        compiler_params=pltpu.CompilerParams(
            dimension_semantics=("parallel", "parallel"),
            vmem_limit_bytes=vmem_limit),
    )(x2)

    # Glue: tiny (N, C) conv-across-channels + sigmoid in plain JAX.
    pooled_mean = sums[:, :, 0] * (1.0 / HW)                        # (N, C) f32
    pad = (k_size - 1) // 2
    padded = jnp.pad(pooled_mean, ((0, 0), (pad, pad)))
    y = jnp.zeros_like(pooled_mean)
    for k in range(k_size):
        y = y + w1[k] * padded[:, k:k + C]
    gates = jax.nn.sigmoid(y)[:, :, None].astype(jnp.float32)       # (N, C, 1)

    # Pass 2: broadcast multiply, C-tiled.
    out2 = pl.pallas_call(
        _eca_apply_kernel,
        out_shape=jax.ShapeDtypeStruct((N, C, HW), x.dtype),
        grid_spec=pltpu.PrefetchScalarGridSpec(
            num_scalar_prefetch=0,
            grid=(N, n_c),
            in_specs=[
                pl.BlockSpec((1, Ct, HW), lambda n, c: (n, c, 0)),
                pl.BlockSpec((1, Ct, 1), lambda n, c: (n, c, 0)),
            ],
            out_specs=pl.BlockSpec((1, Ct, HW), lambda n, c: (n, c, 0)),
        ),
        compiler_params=pltpu.CompilerParams(
            dimension_semantics=("parallel", "parallel"),
            vmem_limit_bytes=vmem_limit),
    )(x2, gates)
    return out2.reshape(N, C, H, W)


def eca_reference(x, conv_weight, k_size=3):
    """Pure-JAX reference matching the PyTorch module."""
    N, C, H, W = x.shape
    pooled = jnp.mean(x, axis=(2, 3))                       # (N, C)
    pad = (k_size - 1) // 2
    w = conv_weight.reshape(k_size)
    padded = jnp.pad(pooled, ((0, 0), (pad, pad)))
    y = jnp.zeros_like(pooled)
    for k in range(k_size):
        y = y + w[k] * padded[:, k:k + C]
    gate = jax.nn.sigmoid(y)[:, :, None, None]              # (N, C, 1, 1)
    return x * gate


if __name__ == "__main__":
    key = jax.random.PRNGKey(0)
    kx1, kx2, kx3, kw = jax.random.split(key, 4)

    k_size = 3
    # Deterministic synthetic Conv1d(1, 1, k_size, bias=False) weight.
    conv_weight = jax.random.normal(kw, (1, 1, k_size), dtype=jnp.float32) * 0.5

    # 1) Lane-aligned spatial (16*16 = 256): single-pass fused path.
    x1 = jax.random.normal(kx1, (2, 4, 16, 16), dtype=jnp.float32)
    o1 = jax.block_until_ready(eca_forward(x1, conv_weight, k_size=k_size))
    r1 = eca_reference(x1, conv_weight, k_size=k_size)
    assert o1.shape == x1.shape and o1.dtype == x1.dtype
    assert jnp.allclose(o1, r1, atol=1e-5, rtol=1e-5), "mismatch (fused, aligned)"

    # 2) Non-128-multiple spatial (7*7 = 49): fused path, masked tail lanes (no pad/slice).
    x2 = jax.random.normal(kx2, (2, 8, 7, 7), dtype=jnp.float32)
    o2 = jax.block_until_ready(eca_forward(x2, conv_weight, k_size=k_size))
    r2 = eca_reference(x2, conv_weight, k_size=k_size)
    assert jnp.allclose(o2, r2, atol=1e-5, rtol=1e-5), "mismatch (fused, unaligned HW)"

    # 3) Force the two-pass C-tiled fallback with an artificially small VMEM budget
    #    (C = 32 is tiled into Ct = 16 channel blocks, grid (N, n_c) fully parallel).
    x3 = jax.random.normal(kx3, (2, 32, 32, 32), dtype=jnp.float32)
    o3 = jax.block_until_ready(
        eca_forward(x3, conv_weight, k_size=k_size, max_block_bytes=600 << 10))
    r3 = eca_reference(x3, conv_weight, k_size=k_size)
    assert jnp.allclose(o3, r3, atol=1e-5, rtol=1e-5), "mismatch (two-pass C-tiled)"

    print("KERNEL_OK")
</pallas_src>

<mosaic_0001>
module attributes {stable_mosaic.version = 11 : i64} {
  func.func @_eca_fused_kernel(%arg0: i32, %arg1: memref<2x4x256xf32, #tpu.memory_space<vmem>>, %arg2: memref<3xf32, #tpu.memory_space<smem>>, %arg3: memref<2x4x256xf32, #tpu.memory_space<vmem>>) attributes {dimension_semantics = [#tpu.dimension_semantics<parallel>], iteration_bounds = array<i64: 1>, scalar_prefetch = 0 : i64, scratch_operands = 0 : i64, tpu.core_type = #tpu.core_type<tc>, window_params = [{transform_indices = @transform_0, window_bounds = array<i64: 2, 4, 256>}, {transform_indices = @transform_1, window_bounds = array<i64: 3>}, {transform_indices = @transform_2, window_bounds = array<i64: 2, 4, 256>}]} {
    %c0 = arith.constant 0 : index
    %0 = memref.load %arg2[%c0] : memref<3xf32, #tpu.memory_space<smem>>
    %c1 = arith.constant 1 : index
    %1 = memref.load %arg2[%c1] : memref<3xf32, #tpu.memory_space<smem>>
    %c2 = arith.constant 2 : index
    %2 = memref.load %arg2[%c2] : memref<3xf32, #tpu.memory_space<smem>>
    %c0_0 = arith.constant 0 : index
    %c0_1 = arith.constant 0 : index
    %c0_2 = arith.constant 0 : index
    %3 = vector.load %arg1[%c0_0, %c0_1, %c0_2] : memref<2x4x256xf32, #tpu.memory_space<vmem>>, vector<1x4x256xf32>
    %4 = vector.shape_cast %3 : vector<1x4x256xf32> to vector<4x256xf32>
    %cst = arith.constant dense<0.000000e+00> : vector<4xf32>
    %5 = vector.multi_reduction <add>, %4, %cst [1] : vector<4x256xf32> to vector<4xf32>
    %6 = vector.shape_cast %5 : vector<4xf32> to vector<4x1xf32>
    %cst_3 = arith.constant 3.906250e-03 : f32
    %7 = vector.broadcast %cst_3 : f32 to vector<4x1xf32>
    %8 = arith.mulf %6, %7 : vector<4x1xf32>
    %cst_4 = arith.constant 0.000000e+00 : f32
    %9 = vector.broadcast %cst_4 : f32 to vector<1x1xf32>
    %10 = tpu.concatenate %9, %8, %9 in 0 : vector<1x1xf32>, vector<4x1xf32>, vector<1x1xf32> -> vector<6x1xf32>
    %cst_5 = arith.constant 0.000000e+00 : f32
    %11 = vector.broadcast %cst_5 : f32 to vector<4x1xf32>
    %12 = vector.extract_strided_slice %10 {offsets = [0, 0], sizes = [4, 1], strides = [1, 1]} : vector<6x1xf32> to vector<4x1xf32>
    %13 = vector.broadcast %0 : f32 to vector<4x1xf32>
    %14 = arith.mulf %13, %12 : vector<4x1xf32>
    %15 = arith.addf %11, %14 : vector<4x1xf32>
    %16 = vector.extract_strided_slice %10 {offsets = [1, 0], sizes = [4, 1], strides = [1, 1]} : vector<6x1xf32> to vector<4x1xf32>
    %17 = vector.broadcast %1 : f32 to vector<4x1xf32>
    %18 = arith.mulf %17, %16 : vector<4x1xf32>
    %19 = arith.addf %15, %18 : vector<4x1xf32>
    %20 = vector.extract_strided_slice %10 {offsets = [2, 0], sizes = [4, 1], strides = [1, 1]} : vector<6x1xf32> to vector<4x1xf32>
    %21 = vector.broadcast %2 : f32 to vector<4x1xf32>
    %22 = arith.mulf %21, %20 : vector<4x1xf32>
    %23 = arith.addf %19, %22 : vector<4x1xf32>
    %24 = arith.negf %23 : vector<4x1xf32>
    %25 = math.exp %24 : vector<4x1xf32>
    %cst_6 = arith.constant 1.000000e+00 : f32
    %26 = vector.broadcast %cst_6 : f32 to vector<4x1xf32>
    %27 = arith.addf %26, %25 : vector<4x1xf32>
    %28 = arith.divf %26, %27 : vector<4x1xf32>
    %c0_7 = arith.constant 0 : index
    %c0_8 = arith.constant 0 : index
    %c0_9 = arith.constant 0 : index
    %29 = vector.load %arg1[%c0_7, %c0_8, %c0_9] : memref<2x4x256xf32, #tpu.memory_space<vmem>>, vector<1x4x256xf32>
    %30 = vector.shape_cast %29 : vector<1x4x256xf32> to vector<4x256xf32>
    %31 = vector.broadcast %28 : vector<4x1xf32> to vector<4x256xf32>
    %32 = arith.mulf %30, %31 : vector<4x256xf32>
    %c0_10 = arith.constant 0 : index
    %c0_11 = arith.constant 0 : index
    %c0_12 = arith.constant 0 : index
    %33 = vector.load %arg3[%c0_10, %c0_11, %c0_12] : memref<2x4x256xf32, #tpu.memory_space<vmem>>, vector<1x4x256xf32>
    %34 = vector.shape_cast %33 : vector<1x4x256xf32> to vector<4x256xf32>
    %35 = vector.shape_cast %32 : vector<4x256xf32> to vector<1x4x256xf32>
    tpu.vector_store %arg3[%c0_10, %c0_11, %c0_12], %35 {strides = array<i32>} : memref<2x4x256xf32, #tpu.memory_space<vmem>>, vector<1x4x256xf32>,
    %c1_13 = arith.constant 1 : index
    %c0_14 = arith.constant 0 : index
    %c0_15 = arith.constant 0 : index
    %36 = vector.load %arg1[%c1_13, %c0_14, %c0_15] : memref<2x4x256xf32, #tpu.memory_space<vmem>>, vector<1x4x256xf32>
    %37 = vector.shape_cast %36 : vector<1x4x256xf32> to vector<4x256xf32>
    %cst_16 = arith.constant dense<0.000000e+00> : vector<4xf32>
    %38 = vector.multi_reduction <add>, %37, %cst_16 [1] : vector<4x256xf32> to vector<4xf32>
    %39 = vector.shape_cast %38 : vector<4xf32> to vector<4x1xf32>
    %cst_17 = arith.constant 3.906250e-03 : f32
    %40 = vector.broadcast %cst_17 : f32 to vector<4x1xf32>
    %41 = arith.mulf %39, %40 : vector<4x1xf32>
    %cst_18 = arith.constant 0.000000e+00 : f32
    %42 = vector.broadcast %cst_18 : f32 to vector<1x1xf32>
    %43 = tpu.concatenate %42, %41, %42 in 0 : vector<1x1xf32>, vector<4x1xf32>, vector<1x1xf32> -> vector<6x1xf32>
    %cst_19 = arith.constant 0.000000e+00 : f32
    %44 = vector.broadcast %cst_19 : f32 to vector<4x1xf32>
    %45 = vector.extract_strided_slice %43 {offsets = [0, 0], sizes = [4, 1], strides = [1, 1]} : vector<6x1xf32> to vector<4x1xf32>
    %46 = vector.broadcast %0 : f32 to vector<4x1xf32>
    %47 = arith.mulf %46, %45 : vector<4x1xf32>
    %48 = arith.addf %44, %47 : vector<4x1xf32>
    %49 = vector.extract_strided_slice %43 {offsets = [1, 0], sizes = [4, 1], strides = [1, 1]} : vector<6x1xf32> to vector<4x1xf32>
    %50 = vector.broadcast %1 : f32 to vector<4x1xf32>
    %51 = arith.mulf %50, %49 : vector<4x1xf32>
    %52 = arith.addf %48, %51 : vector<4x1xf32>
    %53 = vector.extract_strided_slice %43 {offsets = [2, 0], sizes = [4, 1], strides = [1, 1]} : vector<6x1xf32> to vector<4x1xf32>
    %54 = vector.broadcast %2 : f32 to vector<4x1xf32>
    %55 = arith.mulf %54, %53 : vector<4x1xf32>
    %56 = arith.addf %52, %55 : vector<4x1xf32>
    %57 = arith.negf %56 : vector<4x1xf32>
    %58 = math.exp %57 : vector<4x1xf32>
    %cst_20 = arith.constant 1.000000e+00 : f32
    %59 = vector.broadcast %cst_20 : f32 to vector<4x1xf32>
    %60 = arith.addf %59, %58 : vector<4x1xf32>
    %61 = arith.divf %59, %60 : vector<4x1xf32>
    %c1_21 = arith.constant 1 : index
    %c0_22 = arith.constant 0 : index
    %c0_23 = arith.constant 0 : index
    %62 = vector.load %arg1[%c1_21, %c0_22, %c0_23] : memref<2x4x256xf32, #tpu.memory_space<vmem>>, vector<1x4x256xf32>
    %63 = vector.shape_cast %62 : vector<1x4x256xf32> to vector<4x256xf32>
    %64 = vector.broadcast %61 : vector<4x1xf32> to vector<4x256xf32>
    %65 = arith.mulf %63, %64 : vector<4x256xf32>
    %c1_24 = arith.constant 1 : index
    %c0_25 = arith.constant 0 : index
    %c0_26 = arith.constant 0 : index
    %66 = vector.load %arg3[%c1_24, %c0_25, %c0_26] : memref<2x4x256xf32, #tpu.memory_space<vmem>>, vector<1x4x256xf32>
    %67 = vector.shape_cast %66 : vector<1x4x256xf32> to vector<4x256xf32>
    %68 = vector.shape_cast %65 : vector<4x256xf32> to vector<1x4x256xf32>
    tpu.vector_store %arg3[%c1_24, %c0_25, %c0_26], %68 {strides = array<i32>} : memref<2x4x256xf32, #tpu.memory_space<vmem>>, vector<1x4x256xf32>,
    return
  }
  func.func @transform_0(%arg0: i32) -> (i32, i32, i32) {
    %c0_i32 = arith.constant 0 : i32
    %c0_i32_0 = arith.constant 0 : i32
    %c0_i32_1 = arith.constant 0 : i32
    return %arg0, %c0_i32, %c0_i32_0 : i32, i32, i32
  }
  func.func @transform_1(%arg0: i32) -> i32 {
    %c0_i32 = arith.constant 0 : i32
    %c0_i32_0 = arith.constant 0 : i32
    return %c0_i32 : i32
  }
  func.func @transform_2(%arg0: i32) -> (i32, i32, i32) {
    %c0_i32 = arith.constant 0 : i32
    %c0_i32_0 = arith.constant 0 : i32
    %c0_i32_1 = arith.constant 0 : i32
    return %arg0, %c0_i32, %c0_i32_0 : i32, i32, i32
  }
}

</mosaic_0001>

<bundles_post_ra>
// kernel: tpu_custom_call.1
= control target key start
LH: loop header
LB: loop body
LE: loop exit
PB: predicated region body
PF: predicated region fallthrough
CT: control target
= control target key end

     0   :  { %7 = vsyncpa [#allocation3], 0  ;;  %s314_s0 = inlined_call_operand.hbm [shape: f32[2,4,256], index: 0, kind: input, shape index: {}]   ;;  %s315_s1 = inlined_call_operand.vmem [shape: f32[3], index: 1, kind: input, shape index: {}]   ;;  %s316_s2 = inlined_call_operand.hbm [shape: f32[2,4,256], index: 2, kind: output, shape index: {}]  }
   0x1   :  { %8 = vsyncpa [#allocation5], 0 }
   0x2   :  { %9 = vsyncpa [#allocation4], 0  ;;  %s247_s9 = smov [#allocation2]   ;;  %s28_s13 = sshll.u32 %s315_s1, 4  ;;  %s29_s13 = int_to_ptr.vmem [resolvable:$true] %s28_s13 }
   0x3   :  { %s15_s10 = sshll.u32 %s247_s9, 4  ;;  %s185_s16 = scalar_lea.hbm %s314_s0, 256  ;;  %s16_s10 = int_to_ptr.vmem [resolvable:$true] %s15_s10 }
   0x4   :  { %p186_p0 = scmp.ne.s32.totalorder %s314_s0, %s185_s16  ;;  %p189_p1 = scmp.lt.u32.totalorder %s185_s16, %s314_s0 }
   0x6   :  { %p191_p2 = pnand %p189_p1, %p186_p0 }
   0x8   :  { %194 = shalt.err (!%p191_p2)
}
   0x9   :  { %s195_s21 = scalar_lea.vmem %s16_s10, 256  ;;  %p200_p4 = scmp.lt.s32.totalorder %s16_s10, %s16_s10 }
   0xa   :  { %p196_p3 = scmp.ne.s32.totalorder %s16_s10, %s195_s21  ;;  %p201_p5 = scmp.lt.s32.totalorder %s195_s21, %s195_s21 }
   0xc   :  { %p202_p6 = por %p201_p5, %p200_p4 }
   0xe   :  { %p203_p7 = pnand %p202_p6, %p196_p3 }
  0x10   :  { %206 = shalt.err (!%p203_p7)
}
  0x11   :  { %s248_s1 = smov 128   ;;  %s249_s22 = smov 8  }
  0x12   :  { %21 = dma.hbm_to_vmem [thread:$0]  %s314_s0, 256, %s16_s10, [#allocation3], %s248_s1, %s248_s1, %s249_s22  }
  0x13   :  { %s207_s25 = scalar_lea.vmem %s29_s13, 16  ;;  %p212_p9 = scmp.lt.s32.totalorder %s29_s13, %s29_s13 }
  0x14   :  { %p208_p8 = scmp.ne.s32.totalorder %s29_s13, %s207_s25  ;;  %p213_p10 = scmp.lt.s32.totalorder %s207_s25, %s207_s25 }
  0x16   :  { %p214_p11 = por %p213_p10, %p212_p9 }
  0x18   :  { %p215_p12 = pnand %p214_p11, %p208_p8 }
  0x1a   :  { %218 = shalt.err (!%p215_p12)
}
  0x1b   :  { %s250_s26 = smov [#allocation6]  }
  0x1c   :  { %31 = dma.vmem_to_smem %s29_s13, 16, %s250_s26, [#allocation5]  }
  0x1d   :  { %241 = dma.done.wait [#allocation3], 256  }
  0x1e   :  { %242 = vsyncadd [#allocation3], 4294967040 }
  0x1f   :  { %243 = dma.done.wait [#allocation5], 16  }
  0x20   :  { %244 = vsyncadd [#allocation5], 4294967280 }
  0x21   :  { %38 = sfence }
  0x22   :  { %v287_v0 = vld [vmem:[#allocation2] sm:$0xff]  ;;  %vm46_vm0 = vcmask 1043456   ;;  %v289_v1 = vld [vmem:[#allocation2 + $0x8] sm:$0xff]  ;;  %v251_v10 = vmov 0   ;;  %s162_s0 = sld [smem:[#allocation6 + $0x1]]  ;;  %s163_s27 = sld [smem:[#allocation6 + $0x2]]  ;;  %v88_v48 = vlaneseq }
  0x23   :  { %v44_v2 = vcombine.high %v287_v0, %v287_v0  ;;  %v47_v3 = vsel %vm46_vm0, %v287_v0, 0.0  ;;  %v98_v4 = vcombine.high %v289_v1, %v289_v1  ;;  %v100_v6 = vsel %vm46_vm0, %v289_v1, 0.0  ;;  %173 = vset.pattern.permute.xlu1 %v251_v10  ;;  %174 = vset.pattern.permute.xlu0 %v251_v10  ;;  %s39_s28 = sld [smem:[#allocation6]]  ;;  %s253_s29 = smov [#allocation7]  }
  0x24   :  { %vm56_vm1 = vcmask 1040384   ;;  %vm58_vm2 = vcmask 1044480   ;;  %v252_v46 = vmov 839922192   ;;  %v89_v50 = vshrl.u32 %v88_v48, 7  ;;  %s149_s30 = sshll.u32 %s253_s29, 4  ;;  %s150_s30 = int_to_ptr.vmem [resolvable:$true] %s149_s30 }
  0x25   :  { %v48_v5 = vsel %vm46_vm0, %v44_v2, 0.0  ;;  %v101_v7 = vsel %vm46_vm0, %v98_v4, 0.0  ;;  %v86_v47 = vunpack.c.l.s4 %v252_v46  ;;  %s219_s3 = scalar_lea.vmem %s150_s30, 256  ;;  %p224_p0 = scmp.lt.s32.totalorder %s150_s30, %s150_s30 }
  0x26   :  { %v49_v8 = vadd.f32 %v48_v5, %v47_v3  ;;  %v102_v9 = vadd.f32 %v101_v7, %v100_v6  ;;  %p220_p13 = scmp.ne.s32.totalorder %s150_s30, %s219_s3  ;;  %p225_p1 = scmp.lt.s32.totalorder %s219_s3, %s219_s3 }
  0x27   :  { %v87_v49 = vunpack.c.0.s8 %v86_v47 }
  0x28   :  { %50 = vadd.xlane.f32.xlu0 %v49_v8  ;;  %v63_v14 = vstv %s162_s0  ;;  %v69_v15 = vstv %s163_s27  ;;  %p226_p2 = por %p225_p1, %p224_p0 }
  0x29   :  { %v60_v20 = vstv %s39_s28  ;;  %v90_v51 = vsub.s32 %v87_v49, %v89_v50 }
  0x2a   :  { %p227_p3 = pnand %p226_p2, %p220_p13 }
  0x2c   :  { %103 = vadd.xlane.f32.xlu0 %v102_v9 }
  0xb5   :  { %v51_v11 = vpop.xlane.xlu0 %50 }
  0xb6   :  { %v52_v12 = vmul.f32 0.00390625, %v51_v11 }
  0xb8   :  { %v54_v13 = vrot.slane %v52_v12, 7 }
  0xb9   :  { %v104_v16 = vpop.xlane.xlu0 %103 }
  0xba   :  { %v57_v17 = vsel %vm56_vm1, 0.0, %v54_v13  ;;  %v105_v18 = vmul.f32 0.00390625, %v104_v16 }
  0xbb   :  { %v59_v19 = vsel %vm58_vm2, %v57_v17, 0.0 }
  0xbc   :  { %v64_v21 = vmul.f32 %v63_v14, %v59_v19  ;;  %v70_v22 = vmul.f32 %v69_v15, %v59_v19  ;;  %v107_v23 = vrot.slane %v105_v18, 7  ;;  %v61_v24 = vmul.f32 %v60_v20, %v59_v19 }
  0xbe   :  { %v66_v25 = vrot.slane %v64_v21, 1  ;;  %v109_v26 = vsel %vm56_vm1, 0.0, %v107_v23  ;;  %v72_v29 = vrot.slane %v70_v22, 2 }
  0xbf   :  { %v110_v27 = vsel %vm58_vm2, %v109_v26, 0.0 }
  0xc0   :  { %v68_v28 = vadd.f32 %v66_v25, %v61_v24  ;;  %v113_v30 = vmul.f32 %v110_v27, %v63_v14  ;;  %v118_v31 = vmul.f32 %v110_v27, %v69_v15  ;;  %v111_v33 = vmul.f32 %v110_v27, %v60_v20 }
  0xc2   :  { %v74_v32 = vadd.f32 %v72_v29, %v68_v28  ;;  %v115_v34 = vrot.slane %v113_v30, 1  ;;  %v120_v37 = vrot.slane %v118_v31, 2 }
  0xc4   :  { %v164_v35 = vmul.f32 -1.442695, %v74_v32  ;;  %v117_v36 = vadd.f32 %v115_v34, %v111_v33 }
  0xc6   :  { %177 = vpow2.f32 %v164_v35  ;;  %v122_v38 = vadd.f32 %v120_v37, %v117_v36 }
  0xc8   :  { %v165_v39 = vmul.f32 -1.442695, %v122_v38 }
  0xca   :  { %179 = vpow2.f32 %v165_v39 }
  0xd0   :  { %v178_v40 = vpop.eup %177 }
  0xd1   :  { %v78_v41 = vadd.f32 1.0, %v178_v40 }
  0xd3   :  { %181 = vrcp.f32 %v78_v41 }
  0xd4   :  { %v180_v42 = vpop.eup %179 }
  0xd5   :  { %v126_v43 = vadd.f32 1.0, %v180_v42 }
  0xd7   :  { %183 = vrcp.f32 %v126_v43 }
  0xdd   :  { %v182_v44 = vpop.eup %181 }
  0xde   :  { %83 = vperm.xlu1 %173, %v182_v44  }
  0xe1   :  { %v184_v45 = vpop.eup %183 }
  0xe2   :  { %131 = vperm.xlu1 %173, %v184_v45  }
 0x15d   :  { %v84_v52 = vpop.permute.xlu1 %83 }
 0x15e   :  { %v91_v53 = vrot.slane %v84_v52, %v90_v51 }
 0x160   :  { %v93_v54 = vmul.f32 %v91_v53, %v287_v0 }
 0x161   :  { %v132_v55 = vpop.permute.xlu1 %131 }
 0x162   :  { %v139_v56 = vrot.slane %v132_v55, %v90_v51  ;;  %94 = vst [vmem:[#allocation7] sm:$0xff] %v93_v54 }
 0x164   :  { %v141_v57 = vmul.f32 %v139_v56, %v289_v1 }
 0x166   :  { %143 = vst [vmem:[#allocation7 + $0x8] sm:$0xff] %v141_v57 }
 0x167   :  { %230 = shalt.err (!%p227_p3)
}
 0x168   :  { %s231_s6 = scalar_lea.hbm %s316_s2, 256 }
 0x169   :  { %p232_p4 = scmp.ne.s32.totalorder %s316_s2, %s231_s6  ;;  %p235_p5 = scmp.lt.u32.totalorder %s231_s6, %s316_s2 }
 0x16b   :  { %p237_p6 = pnand %p235_p5, %p232_p4 }
 0x16d   :  { %240 = shalt.err (!%p237_p6)
}
 0x16e   :  { %155 = dma.vmem_to_hbm [thread:$0]  %s150_s30, 256, %s316_s2, [#allocation4], %s248_s1, %s248_s1, %s249_s22  }
 0x16f   :  { %245 = dma.done.wait [#allocation4], 256  }
 0x170   :  { %246 = vsyncadd [#allocation4], 4294967040 }
 0x171   :  { %159 = vsyncpa [#allocation3], 1 }
 0x172   :  { %160 = vsyncpa [#allocation4], 1 }
 0x173   :  { %161 = vsyncpa [#allocation5], 1 }

</bundles_post_ra>
